<compile_context>
chip_gen: v6e
topology: v6e:2x2x1
jax: 0.10.0
libtpu: 0.0.40
codegen_flags: <defaults>
</compile_context>

<pallas_src>
import functools

import jax
import jax.numpy as jnp
from jax.experimental import pallas as pl
from jax.experimental.pallas import tpu as pltpu


def _leaky_relu(x, negative_slope=0.01):
    # max(x, a*x) == leaky_relu(x) for 0 < a < 1 (mul + max on the VPU).
    return jnp.maximum(x, negative_slope * x)


def _round_up(x, m):
    return (x + m - 1) // m * m


def insurance_nn_kernel(
    x_ref,
    w1_ref, b1_ref,
    w2_ref, b2_ref,
    w3_ref, b3_ref,
    w4_ref, b4_ref,
    w5_ref, b5_ref,
    o_ref,
):
    mxu_dtype = w1_ref.dtype  # f32, or bf16 on the fast path
    x = x_ref[...]

    # Layer 1: Linear(input_dim, 256) + LeakyReLU   (Dropout = identity in eval)
    h = jnp.dot(x, w1_ref[...], preferred_element_type=jnp.float32) + b1_ref[...]
    h = _leaky_relu(h)

    # Layer 2: Linear(256, 128) + LeakyReLU         (Dropout = identity in eval)
    h = jnp.dot(h.astype(mxu_dtype), w2_ref[...],
                preferred_element_type=jnp.float32) + b2_ref[...]
    h = _leaky_relu(h)

    # Layer 3: Linear(128, 64) + LeakyReLU
    h = jnp.dot(h.astype(mxu_dtype), w3_ref[...],
                preferred_element_type=jnp.float32) + b3_ref[...]
    h = _leaky_relu(h)

    # Layer 4: Linear(64, 32) + LeakyReLU
    h = jnp.dot(h.astype(mxu_dtype), w4_ref[...],
                preferred_element_type=jnp.float32) + b4_ref[...]
    h = _leaky_relu(h)

    # Layer 5: Linear(32, 1) — VPU multiply + cross-lane reduction instead of
    # an N=1 MXU matmul. w5 is stored as a (1, 32) row.
    out = jnp.sum(h * w5_ref[...], axis=-1, keepdims=True) + b5_ref[...]
    o_ref[...] = out.astype(o_ref.dtype)


@functools.partial(jax.jit, static_argnames=("tile_b", "use_bf16"))
def insurance_nn_forward(x, params, *, tile_b=1024, use_bf16=False):
    """x: [B, input_dim] float32. params: dict (w1..w4 transposed (in,out),
    w5 as a (1, 32) row, biases (1, out))."""
    batch, input_dim = x.shape
    mxu_dtype = jnp.bfloat16 if use_bf16 else jnp.float32

    # Effective batch tile: multiple of 8 sublanes, no larger than needed.
    tb = min(int(tile_b), _round_up(batch, 8))
    tb = _round_up(tb, 8)
    padded = _round_up(batch, tb)
    if padded != batch:
        x = jnp.pad(x, ((0, padded - batch), (0, 0)))
    x = x.astype(mxu_dtype)

    # MXU operand weights may be bf16; biases + tail layer stay f32.
    w1 = params["w1"].astype(mxu_dtype)
    w2 = params["w2"].astype(mxu_dtype)
    w3 = params["w3"].astype(mxu_dtype)
    w4 = params["w4"].astype(mxu_dtype)
    w5 = params["w5"].astype(jnp.float32)
    b1, b2, b3, b4, b5 = (params[f"b{i}"].astype(jnp.float32) for i in range(1, 6))

    args = (x, w1, b1, w2, b2, w3, b3, w4, b4, w5, b5)

    grid = (padded // tb,)
    const_map = lambda i: (0, 0)  # weights/biases: same block every step (resident)
    in_specs = [pl.BlockSpec((tb, input_dim), lambda i: (i, 0))]
    in_specs += [pl.BlockSpec(a.shape, const_map) for a in args[1:]]
    out_specs = pl.BlockSpec((tb, 1), lambda i: (i, 0))

    # VMEM budget: resident weights (x2 headroom), double-buffered x/out tiles,
    # and the live f32 intermediates (largest is (tb, 256)), plus slack.
    weight_bytes = sum(a.size * a.dtype.itemsize for a in args[1:])
    tile_io_bytes = 2 * tb * input_dim * x.dtype.itemsize + 2 * tb * 4
    interm_bytes = 4 * tb * 256 * 4
    vmem_limit = min(2 * weight_bytes + tile_io_bytes + interm_bytes + (8 << 20),
                     48 << 20)

    flops_per_row = 2 * (input_dim * 256 + 256 * 128 + 128 * 64 + 64 * 32 + 32 * 1)
    cost = pl.CostEstimate(
        flops=padded * flops_per_row,
        transcendentals=0,
        bytes_accessed=padded * input_dim * x.dtype.itemsize
        + padded * 4
        + weight_bytes,
    )

    out = pl.pallas_call(
        insurance_nn_kernel,
        out_shape=jax.ShapeDtypeStruct((padded, 1), jnp.float32),
        grid=grid,
        in_specs=in_specs,
        out_specs=out_specs,
        compiler_params=pltpu.CompilerParams(
            dimension_semantics=("parallel",),
            vmem_limit_bytes=int(vmem_limit),
        ),
        cost_estimate=cost,
    )(*args)
    return out[:batch]


def init_params(key, input_dim):
    """Deterministic init mimicking nn.Linear's uniform(-1/sqrt(fan_in), +...).

    w1..w4 stored transposed: (in, out). w5 stored as a (1, 32) row (PyTorch
    (out, in) layout) for the VPU tail. Biases shaped (1, out)."""
    dims = [input_dim, 256, 128, 64, 32, 1]
    params = {}
    for i in range(5):
        fan_in, fan_out = dims[i], dims[i + 1]
        key, kw, kb = jax.random.split(key, 3)
        bound = 1.0 / jnp.sqrt(fan_in)
        w = jax.random.uniform(kw, (fan_in, fan_out), jnp.float32, -bound, bound)
        if i == 4:
            w = w.T  # (1, 32) row for the reduction-based final layer
        params[f"w{i+1}"] = w
        params[f"b{i+1}"] = jax.random.uniform(
            kb, (1, fan_out), jnp.float32, -bound, bound
        )
    return params


def reference_forward(x, params):
    """Plain-JAX reference for correctness checking."""
    h = x
    for i in range(1, 5):
        h = h @ params[f"w{i}"] + params[f"b{i}"]
        h = jnp.where(h > 0, h, 0.01 * h)
    return h @ params["w5"].T + params["b5"]


if __name__ == "__main__":
    key = jax.random.PRNGKey(0)
    input_dim = 16
    batch = 8

    kx, kp = jax.random.split(key)
    x = jax.random.normal(kx, (batch, input_dim), jnp.float32)
    params = init_params(kp, input_dim)

    ref = reference_forward(x, params)

    # f32 path: must match the plain-JAX (PyTorch-equivalent) reference tightly.
    out = jax.block_until_ready(insurance_nn_forward(x, params))
    assert out.shape == (batch, 1)
    assert jnp.allclose(out, ref, atol=1e-4, rtol=1e-4), "f32 mismatch vs reference"

    # bf16-MXU fast path (v6e/v7x): f32 accumulation, looser tolerance.
    out_bf16 = jax.block_until_ready(insurance_nn_forward(x, params, use_bf16=True))
    assert out_bf16.shape == (batch, 1)
    assert jnp.allclose(out_bf16, ref, atol=1e-1, rtol=1e-1), "bf16 mismatch vs reference"

    print("KERNEL_OK")
</pallas_src>

<mosaic_0001>
module attributes {stable_mosaic.version = 11 : i64} {
  func.func @insurance_nn_kernel(%arg0: i32, %arg1: memref<8x16xf32, #tpu.memory_space<vmem>>, %arg2: memref<16x256xf32, #tpu.memory_space<vmem>>, %arg3: memref<1x256xf32, #tpu.memory_space<vmem>>, %arg4: memref<256x128xf32, #tpu.memory_space<vmem>>, %arg5: memref<1x128xf32, #tpu.memory_space<vmem>>, %arg6: memref<128x64xf32, #tpu.memory_space<vmem>>, %arg7: memref<1x64xf32, #tpu.memory_space<vmem>>, %arg8: memref<64x32xf32, #tpu.memory_space<vmem>>, %arg9: memref<1x32xf32, #tpu.memory_space<vmem>>, %arg10: memref<1x32xf32, #tpu.memory_space<vmem>>, %arg11: memref<1x1xf32, #tpu.memory_space<vmem>>, %arg12: memref<8x1xf32, #tpu.memory_space<vmem>>) attributes {dimension_semantics = [#tpu.dimension_semantics<parallel>], iteration_bounds = array<i64: 1>, scalar_prefetch = 0 : i64, scratch_operands = 0 : i64, tpu.core_type = #tpu.core_type<tc>, window_params = [{transform_indices = @transform_0, window_bounds = array<i64: 8, 16>}, {pipeline_mode = #tpu.pipeline_mode<synchronous>, transform_indices = @transform_1, window_bounds = array<i64: 16, 256>}, {pipeline_mode = #tpu.pipeline_mode<synchronous>, transform_indices = @transform_2, window_bounds = array<i64: 1, 256>}, {pipeline_mode = #tpu.pipeline_mode<synchronous>, transform_indices = @transform_3, window_bounds = array<i64: 256, 128>}, {pipeline_mode = #tpu.pipeline_mode<synchronous>, transform_indices = @transform_4, window_bounds = array<i64: 1, 128>}, {pipeline_mode = #tpu.pipeline_mode<synchronous>, transform_indices = @transform_5, window_bounds = array<i64: 128, 64>}, {pipeline_mode = #tpu.pipeline_mode<synchronous>, transform_indices = @transform_6, window_bounds = array<i64: 1, 64>}, {pipeline_mode = #tpu.pipeline_mode<synchronous>, transform_indices = @transform_7, window_bounds = array<i64: 64, 32>}, {pipeline_mode = #tpu.pipeline_mode<synchronous>, transform_indices = @transform_8, window_bounds = array<i64: 1, 32>}, {pipeline_mode = #tpu.pipeline_mode<synchronous>, transform_indices = @transform_9, window_bounds = array<i64: 1, 32>}, {pipeline_mode = #tpu.pipeline_mode<synchronous>, transform_indices = @transform_10, window_bounds = array<i64: 1, 1>}, {transform_indices = @transform_11, window_bounds = array<i64: 8, 1>}]} {
    %c0 = arith.constant 0 : index
    %c0_0 = arith.constant 0 : index
    %0 = vector.load %arg1[%c0, %c0_0] : memref<8x16xf32, #tpu.memory_space<vmem>>, vector<8x16xf32>
    %c0_1 = arith.constant 0 : index
    %c0_2 = arith.constant 0 : index
    %1 = vector.load %arg2[%c0_1, %c0_2] : memref<16x256xf32, #tpu.memory_space<vmem>>, vector<16x256xf32>
    %cst = arith.constant dense<0.000000e+00> : vector<8x256xf32>
    %2 = tpu.matmul %0, %1, %cst {dimension_numbers = #tpu.dot_dimension_numbers<[1], [0], [0], [1], [0, 0, 1, 1], [], []>} : vector<8x16xf32>, vector<16x256xf32>, vector<8x256xf32> -> vector<8x256xf32>
    %c0_3 = arith.constant 0 : index
    %c0_4 = arith.constant 0 : index
    %3 = vector.load %arg3[%c0_3, %c0_4] : memref<1x256xf32, #tpu.memory_space<vmem>>, vector<1x256xf32>
    %4 = vector.broadcast %3 : vector<1x256xf32> to vector<8x256xf32>
    %5 = arith.addf %2, %4 : vector<8x256xf32>
    %cst_5 = arith.constant 0.00999999977 : f32
    %6 = vector.broadcast %cst_5 : f32 to vector<8x256xf32>
    %7 = arith.mulf %6, %5 : vector<8x256xf32>
    %8 = arith.maximumf %5, %7 : vector<8x256xf32>
    %c0_6 = arith.constant 0 : index
    %c0_7 = arith.constant 0 : index
    %9 = vector.load %arg4[%c0_6, %c0_7] : memref<256x128xf32, #tpu.memory_space<vmem>>, vector<256x128xf32>
    %cst_8 = arith.constant dense<0.000000e+00> : vector<8x128xf32>
    %10 = tpu.matmul %8, %9, %cst_8 {dimension_numbers = #tpu.dot_dimension_numbers<[1], [0], [0], [1], [0, 0, 1, 1], [], []>} : vector<8x256xf32>, vector<256x128xf32>, vector<8x128xf32> -> vector<8x128xf32>
    %c0_9 = arith.constant 0 : index
    %c0_10 = arith.constant 0 : index
    %11 = vector.load %arg5[%c0_9, %c0_10] : memref<1x128xf32, #tpu.memory_space<vmem>>, vector<1x128xf32>
    %12 = vector.broadcast %11 : vector<1x128xf32> to vector<8x128xf32>
    %13 = arith.addf %10, %12 : vector<8x128xf32>
    %cst_11 = arith.constant 0.00999999977 : f32
    %14 = vector.broadcast %cst_11 : f32 to vector<8x128xf32>
    %15 = arith.mulf %14, %13 : vector<8x128xf32>
    %16 = arith.maximumf %13, %15 : vector<8x128xf32>
    %c0_12 = arith.constant 0 : index
    %c0_13 = arith.constant 0 : index
    %17 = vector.load %arg6[%c0_12, %c0_13] : memref<128x64xf32, #tpu.memory_space<vmem>>, vector<128x64xf32>
    %cst_14 = arith.constant dense<0.000000e+00> : vector<8x64xf32>
    %18 = tpu.matmul %16, %17, %cst_14 {dimension_numbers = #tpu.dot_dimension_numbers<[1], [0], [0], [1], [0, 0, 1, 1], [], []>} : vector<8x128xf32>, vector<128x64xf32>, vector<8x64xf32> -> vector<8x64xf32>
    %c0_15 = arith.constant 0 : index
    %c0_16 = arith.constant 0 : index
    %19 = vector.load %arg7[%c0_15, %c0_16] : memref<1x64xf32, #tpu.memory_space<vmem>>, vector<1x64xf32>
    %20 = vector.broadcast %19 : vector<1x64xf32> to vector<8x64xf32>
    %21 = arith.addf %18, %20 : vector<8x64xf32>
    %cst_17 = arith.constant 0.00999999977 : f32
    %22 = vector.broadcast %cst_17 : f32 to vector<8x64xf32>
    %23 = arith.mulf %22, %21 : vector<8x64xf32>
    %24 = arith.maximumf %21, %23 : vector<8x64xf32>
    %c0_18 = arith.constant 0 : index
    %c0_19 = arith.constant 0 : index
    %25 = vector.load %arg8[%c0_18, %c0_19] : memref<64x32xf32, #tpu.memory_space<vmem>>, vector<64x32xf32>
    %cst_20 = arith.constant dense<0.000000e+00> : vector<8x32xf32>
    %26 = tpu.matmul %24, %25, %cst_20 {dimension_numbers = #tpu.dot_dimension_numbers<[1], [0], [0], [1], [0, 0, 1, 1], [], []>} : vector<8x64xf32>, vector<64x32xf32>, vector<8x32xf32> -> vector<8x32xf32>
    %c0_21 = arith.constant 0 : index
    %c0_22 = arith.constant 0 : index
    %27 = vector.load %arg9[%c0_21, %c0_22] : memref<1x32xf32, #tpu.memory_space<vmem>>, vector<1x32xf32>
    %28 = vector.broadcast %27 : vector<1x32xf32> to vector<8x32xf32>
    %29 = arith.addf %26, %28 : vector<8x32xf32>
    %cst_23 = arith.constant 0.00999999977 : f32
    %30 = vector.broadcast %cst_23 : f32 to vector<8x32xf32>
    %31 = arith.mulf %30, %29 : vector<8x32xf32>
    %32 = arith.maximumf %29, %31 : vector<8x32xf32>
    %c0_24 = arith.constant 0 : index
    %c0_25 = arith.constant 0 : index
    %33 = vector.load %arg10[%c0_24, %c0_25] : memref<1x32xf32, #tpu.memory_space<vmem>>, vector<1x32xf32>
    %34 = vector.broadcast %33 : vector<1x32xf32> to vector<8x32xf32>
    %35 = arith.mulf %32, %34 : vector<8x32xf32>
    %cst_26 = arith.constant dense<0.000000e+00> : vector<8xf32>
    %36 = vector.multi_reduction <add>, %35, %cst_26 [1] : vector<8x32xf32> to vector<8xf32>
    %37 = vector.shape_cast %36 : vector<8xf32> to vector<8x1xf32>
    %c0_27 = arith.constant 0 : index
    %c0_28 = arith.constant 0 : index
    %38 = vector.load %arg11[%c0_27, %c0_28] : memref<1x1xf32, #tpu.memory_space<vmem>>, vector<1x1xf32>
    %39 = vector.broadcast %38 : vector<1x1xf32> to vector<8x1xf32>
    %40 = arith.addf %37, %39 : vector<8x1xf32>
    %c0_29 = arith.constant 0 : index
    %c0_30 = arith.constant 0 : index
    %41 = vector.load %arg12[%c0_29, %c0_30] : memref<8x1xf32, #tpu.memory_space<vmem>>, vector<8x1xf32>
    tpu.vector_store %arg12[%c0_29, %c0_30], %40 {strides = array<i32>} : memref<8x1xf32, #tpu.memory_space<vmem>>, vector<8x1xf32>,
    return
  }
  func.func @transform_0(%arg0: i32) -> (i32, i32) {
    %c0_i32 = arith.constant 0 : i32
    %c0_i32_0 = arith.constant 0 : i32
    return %arg0, %c0_i32 : i32, i32
  }
  func.func @transform_1(%arg0: i32) -> (i32, i32) {
    %c0_i32 = arith.constant 0 : i32
    %c0_i32_0 = arith.constant 0 : i32
    %c0_i32_1 = arith.constant 0 : i32
    return %c0_i32, %c0_i32_0 : i32, i32
  }
  func.func @transform_2(%arg0: i32) -> (i32, i32) {
    %c0_i32 = arith.constant 0 : i32
    %c0_i32_0 = arith.constant 0 : i32
    %c0_i32_1 = arith.constant 0 : i32
    return %c0_i32, %c0_i32_0 : i32, i32
  }
  func.func @transform_3(%arg0: i32) -> (i32, i32) {
    %c0_i32 = arith.constant 0 : i32
    %c0_i32_0 = arith.constant 0 : i32
    %c0_i32_1 = arith.constant 0 : i32
    return %c0_i32, %c0_i32_0 : i32, i32
  }
  func.func @transform_4(%arg0: i32) -> (i32, i32) {
    %c0_i32 = arith.constant 0 : i32
    %c0_i32_0 = arith.constant 0 : i32
    %c0_i32_1 = arith.constant 0 : i32
    return %c0_i32, %c0_i32_0 : i32, i32
  }
  func.func @transform_5(%arg0: i32) -> (i32, i32) {
    %c0_i32 = arith.constant 0 : i32
    %c0_i32_0 = arith.constant 0 : i32
    %c0_i32_1 = arith.constant 0 : i32
    return %c0_i32, %c0_i32_0 : i32, i32
  }
  func.func @transform_6(%arg0: i32) -> (i32, i32) {
    %c0_i32 = arith.constant 0 : i32
    %c0_i32_0 = arith.constant 0 : i32
    %c0_i32_1 = arith.constant 0 : i32
    return %c0_i32, %c0_i32_0 : i32, i32
  }
  func.func @transform_7(%arg0: i32) -> (i32, i32) {
    %c0_i32 = arith.constant 0 : i32
    %c0_i32_0 = arith.constant 0 : i32
    %c0_i32_1 = arith.constant 0 : i32
    return %c0_i32, %c0_i32_0 : i32, i32
  }
  func.func @transform_8(%arg0: i32) -> (i32, i32) {
    %c0_i32 = arith.constant 0 : i32
    %c0_i32_0 = arith.constant 0 : i32
    %c0_i32_1 = arith.constant 0 : i32
    return %c0_i32, %c0_i32_0 : i32, i32
  }
  func.func @transform_9(%arg0: i32) -> (i32, i32) {
    %c0_i32 = arith.constant 0 : i32
    %c0_i32_0 = arith.constant 0 : i32
    %c0_i32_1 = arith.constant 0 : i32
    return %c0_i32, %c0_i32_0 : i32, i32
  }
  func.func @transform_10(%arg0: i32) -> (i32, i32) {
    %c0_i32 = arith.constant 0 : i32
    %c0_i32_0 = arith.constant 0 : i32
    %c0_i32_1 = arith.constant 0 : i32
    return %c0_i32, %c0_i32_0 : i32, i32
  }
  func.func @transform_11(%arg0: i32) -> (i32, i32) {
    %c0_i32 = arith.constant 0 : i32
    %c0_i32_0 = arith.constant 0 : i32
    return %arg0, %c0_i32 : i32, i32
  }
}

</mosaic_0001>

<bundles_post_ra>
// kernel: insurance_nn_forward.1
= control target key start
LH: loop header
LB: loop body
LE: loop exit
PB: predicated region body
PF: predicated region fallthrough
CT: control target
= control target key end

     0   :  { %s913_s0 = inlined_call_operand.vmem [shape: f32[8,16], index: 0, kind: input, shape index: {}]   ;;  %s914_s1 = inlined_call_operand.vmem [shape: f32[16,256], index: 1, kind: input, shape index: {}]   ;;  %s915_s2 = inlined_call_operand.vmem [shape: f32[1,256], index: 2, kind: input, shape index: {}]   ;;  %s916_s3 = inlined_call_operand.vmem [shape: f32[256,128], index: 3, kind: input, shape index: {}]   ;;  %s917_s4 = inlined_call_operand.vmem [shape: f32[1,128], index: 4, kind: input, shape index: {}]   ;;  %s918_s5 = inlined_call_operand.vmem [shape: f32[128,64], index: 5, kind: input, shape index: {}]   ;;  %s919_s6 = inlined_call_operand.vmem [shape: f32[1,64], index: 6, kind: input, shape index: {}]   ;;  %s920_s7 = inlined_call_operand.vmem [shape: f32[64,32], index: 7, kind: input, shape index: {}]   ;;  %s921_s8 = inlined_call_operand.hbm [shape: f32[1,32], index: 8, kind: input, shape index: {}]   ;;  %s922_s9 = inlined_call_operand.vmem [shape: f32[1,32], index: 9, kind: input, shape index: {}]   ;;  %s923_s10 = inlined_call_operand.<no memory space> [shape: f32[1,1], index: 10, kind: input, shape index: {}]   ;;  %s924_s11 = inlined_call_operand.vmem [shape: f32[8,1], index: 11, kind: output, shape index: {}]  }
   0x1   :  { %v16_v0 = vstv %s923_s10 }
   0x2   :  { %17 = vst [vmem:[#allocation2] sm:$0x1] %v16_v0 }
   0x3   :  { %18 = vsyncpa [#allocation4], 0  ;;  %s619_s19 = smov [#allocation3]  }
   0x4   :  { %s41_s20 = sshll.u32 %s619_s19, 4  ;;  %s42_s20 = int_to_ptr.vmem [resolvable:$true] %s41_s20 }
   0x5   :  { %s605_s21 = scalar_lea.vmem %s42_s20, 16  ;;  %s609_s22 = scalar_lea.vmem %s42_s20, 32 }
   0x6   :  { %p606_p0 = scmp.ne.s32.totalorder %s42_s20, %s605_s21  ;;  %p610_p1 = scmp.lt.s32.totalorder %s42_s20, %s42_s20 }
   0x7   :  { %p611_p2 = scmp.lt.s32.totalorder %s609_s22, %s605_s21 }
   0x9   :  { %p612_p3 = por %p611_p2, %p610_p1 }
   0xb   :  { %p613_p4 = pnand %p612_p3, %p606_p0 }
   0xd   :  { %616 = shalt.err (!%p613_p4)
}
   0xe   :  { %44 = dma.hbm_to_vmem [thread:$0]  %s921_s8, 16, %s42_s20, [#allocation4]  }
   0xf   :  { %617 = dma.done.wait [#allocation4], 16  }
  0x10   :  { %618 = vsyncadd [#allocation4], 4294967280  ;;  %v620_v1 = vmov 0.0   ;;  %v56_v2 = vld [vmem:[%s914_s1 + $0x18] sm:$0xff]  ;;  %v55_v3 = vld [vmem:[%s914_s1 + $0x10] sm:$0xff]  ;;  %vm69_vm0 = vcmask 130048   ;;  %v59_v49 = vlaneseq }
  0x11   :  { %137 = vmatprep.mubr.f32.mxu0 %v620_v1  ;;  %v54_v4 = vld [vmem:[%s914_s1 + $0x8] sm:$0xff]  ;;  %101 = vmatprep.subr.mxu0 %v56_v2  ;;  %v53_v5 = vld [vmem:[%s914_s1] sm:$0xff]  ;;  %v179_v7 = vld [vmem:[%s916_s3 + $0xf8] sm:$0xff]  ;;  %vm621_vm1 = vmmov 0   ;;  %vm369_vm2 = vcmask 523264   ;;  %vm453_vm3 = vcmask 261120  }
  0x12   :  { %v52_v6 = vld [vmem:[%s913_s0] sm:$0xff]  ;;  %102 = vmatpush1.msra.mxu0 %v55_v3  ;;  %479 = vmatprep.subr.mxu1 %v179_v7  ;;  %v163_v8 = vld [vmem:[%s916_s3 + $0x78] sm:$0xff]  ;;  %v178_v9 = vld [vmem:[%s916_s3 + $0xf0] sm:$0xff]  ;;  %v60_v50 = vshrl.u32 %v59_v49, 7  ;;  %vm465_vm4 = vcmask 7168  }
  0x13   :  { %v162_v10 = vld [vmem:[%s916_s3 + $0x70] sm:$0xff]  ;;  %103 = vmatprep.subr.mxu0 %v54_v4  ;;  %480 = vmatpush3.msra.mxu1 %v163_v8  ;;  %v177_v11 = vld [vmem:[%s916_s3 + $0xe8] sm:$0xff]  ;;  %v176_v13 = vld [vmem:[%s916_s3 + $0xe0] sm:$0xff] }
  0x14   :  { %104 = vmatpush1.msra.mxu0 %v53_v5  ;;  %481 = vmatprep.subr.mxu1 %v178_v9  ;;  %v161_v12 = vld [vmem:[%s916_s3 + $0x68] sm:$0xff]  ;;  %v160_v14 = vld [vmem:[%s916_s3 + $0x60] sm:$0xff]  ;;  %v175_v15 = vld [vmem:[%s916_s3 + $0xd8] sm:$0xff]  ;;  %v61_v51 = vsub.s32 0, %v60_v50  ;;  %v65_v53 = vsub.s32 1, %v60_v50 }
  0x15   :  { %472 = vmatmul.mubr.msk.f32.vlgmr.msra.gmra.mxu0 %vm69_vm0, %v52_v6  ;;  %482 = vmatpush3.msra.mxu1 %v162_v10  ;;  %v159_v16 = vld [vmem:[%s916_s3 + $0x58] sm:$0xff]  ;;  %v174_v17 = vld [vmem:[%s916_s3 + $0xd0] sm:$0xff]  ;;  %v173_v19 = vld [vmem:[%s916_s3 + $0xc8] sm:$0xff] }
  0x16   :  { %483 = vmatprep.subr.mxu1 %v177_v11  ;;  %540 = vmatprep.subr.mxu0 %v620_v1  ;;  %v158_v18 = vld [vmem:[%s916_s3 + $0x50] sm:$0xff]  ;;  %v157_v20 = vld [vmem:[%s916_s3 + $0x48] sm:$0xff]  ;;  %v172_v21 = vld [vmem:[%s916_s3 + $0xc0] sm:$0xff] }
  0x17   :  { %484 = vmatpush3.msra.mxu1 %v161_v12  ;;  %v156_v22 = vld [vmem:[%s916_s3 + $0x40] sm:$0xff]  ;;  %v171_v23 = vld [vmem:[%s916_s3 + $0xb8] sm:$0xff]  ;;  %v170_v25 = vld [vmem:[%s916_s3 + $0xb0] sm:$0xff]  ;;  %572 = vmatprep.mubr.msk.f32.mxu0 %vm621_vm1, %v620_v1 }
  0x18   :  { %485 = vmatprep.subr.mxu1 %v176_v13  ;;  %v155_v24 = vld [vmem:[%s916_s3 + $0x38] sm:$0xff]  ;;  %v154_v26 = vld [vmem:[%s916_s3 + $0x30] sm:$0xff]  ;;  %v169_v27 = vld [vmem:[%s916_s3 + $0xa8] sm:$0xff] }
  0x19   :  { %486 = vmatpush3.msra.mxu1 %v160_v14  ;;  %v153_v28 = vld [vmem:[%s916_s3 + $0x28] sm:$0xff]  ;;  %v168_v29 = vld [vmem:[%s916_s3 + $0xa0] sm:$0xff]  ;;  %v167_v31 = vld [vmem:[%s916_s3 + $0x98] sm:$0xff] }
  0x1a   :  { %487 = vmatprep.subr.mxu1 %v175_v15  ;;  %v152_v30 = vld [vmem:[%s916_s3 + $0x20] sm:$0xff]  ;;  %v151_v32 = vld [vmem:[%s916_s3 + $0x18] sm:$0xff]  ;;  %v166_v33 = vld [vmem:[%s916_s3 + $0x90] sm:$0xff] }
  0x1b   :  { %488 = vmatpush3.msra.mxu1 %v159_v16  ;;  %v150_v34 = vld [vmem:[%s916_s3 + $0x10] sm:$0xff]  ;;  %v165_v35 = vld [vmem:[%s916_s3 + $0x88] sm:$0xff]  ;;  %v164_v37 = vld [vmem:[%s916_s3 + $0x80] sm:$0xff] }
  0x1c   :  { %489 = vmatprep.subr.mxu1 %v174_v17  ;;  %v149_v36 = vld [vmem:[%s916_s3 + $0x8] sm:$0xff]  ;;  %v148_v38 = vld [vmem:[%s916_s3] sm:$0xff]  ;;  %v274_v39 = vld [vmem:[%s918_s5 + $0x78] sm:$0xff] }
  0x1d   :  { %490 = vmatpush3.msra.mxu1 %v158_v18  ;;  %v273_v40 = vld [vmem:[%s918_s5 + $0x70] sm:$0xff]  ;;  %541 = vmatpush3.msra.mxu0 %v274_v39  ;;  %v272_v41 = vld [vmem:[%s918_s5 + $0x68] sm:$0xff]  ;;  %v271_v42 = vld [vmem:[%s918_s5 + $0x60] sm:$0xff] }
  0x1e   :  { %491 = vmatprep.subr.mxu1 %v173_v19  ;;  %542 = vmatprep.subr.mxu0 %v620_v1  ;;  %v270_v43 = vld [vmem:[%s918_s5 + $0x58] sm:$0xff]  ;;  %v269_v44 = vld [vmem:[%s918_s5 + $0x50] sm:$0xff]  ;;  %v268_v45 = vld [vmem:[%s918_s5 + $0x48] sm:$0xff] }
  0x1f   :  { %492 = vmatpush3.msra.mxu1 %v157_v20  ;;  %543 = vmatpush3.msra.mxu0 %v273_v40  ;;  %v267_v46 = vld [vmem:[%s918_s5 + $0x40] sm:$0xff]  ;;  %v266_v47 = vld [vmem:[%s918_s5 + $0x38] sm:$0xff]  ;;  %v265_v48 = vld [vmem:[%s918_s5 + $0x30] sm:$0xff] }
  0x20   :  { %493 = vmatprep.subr.mxu1 %v172_v21  ;;  %544 = vmatprep.subr.mxu0 %v620_v1  ;;  %v57_v52 = vld [vmem:[%s915_s2] sm:$0x3]  ;;  %v264_v0 = vld [vmem:[%s918_s5 + $0x28] sm:$0xff]  ;;  %v262_v3 = vld [vmem:[%s918_s5 + $0x18] sm:$0xff] }
  0x21   :  { %494 = vmatpush3.msra.mxu1 %v156_v22  ;;  %545 = vmatpush3.msra.mxu0 %v272_v41  ;;  %v62_v54 = vrot.slane %v57_v52, %v61_v51  ;;  %v66_v55 = vrot.slane %v57_v52, %v65_v53  ;;  %v263_v2 = vld [vmem:[%s918_s5 + $0x20] sm:$0xff]  ;;  %v261_v4 = vld [vmem:[%s918_s5 + $0x10] sm:$0xff]  ;;  %v260_v5 = vld [vmem:[%s918_s5 + $0x8] sm:$0xff] }
  0x22   :  { %495 = vmatprep.subr.mxu1 %v171_v23  ;;  %546 = vmatprep.subr.mxu0 %v620_v1  ;;  %v259_v6 = vld [vmem:[%s918_s5] sm:$0xff]  ;;  %v361_v7 = vld [vmem:[%s920_s7 + $0x38] sm:$0xff]  ;;  %v360_v8 = vld [vmem:[%s920_s7 + $0x30] sm:$0xff] }
  0x23   :  { %496 = vmatpush3.msra.mxu1 %v155_v24  ;;  %547 = vmatpush3.msra.mxu0 %v271_v42  ;;  %v359_v9 = vld [vmem:[%s920_s7 + $0x28] sm:$0xff]  ;;  %v358_v10 = vld [vmem:[%s920_s7 + $0x20] sm:$0xff]  ;;  %v357_v18 = vld [vmem:[%s920_s7 + $0x18] sm:$0xff] }
  0x24   :  { %497 = vmatprep.subr.mxu1 %v170_v25  ;;  %548 = vmatprep.subr.mxu0 %v620_v1  ;;  %v473_v12 = vld [vmem:[%s917_s4] ss:$0 sm:$0xff]  ;;  %v356_v19 = vld [vmem:[%s920_s7 + $0x10] sm:$0xff]  ;;  %v355_v20 = vld [vmem:[%s920_s7 + $0x8] sm:$0xff] }
  0x25   :  { %498 = vmatpush3.msra.mxu1 %v154_v26  ;;  %549 = vmatpush3.msra.mxu0 %v270_v43  ;;  %v354_v21 = vld [vmem:[%s920_s7] sm:$0xff] }
  0x26   :  { %499 = vmatprep.subr.mxu1 %v169_v27  ;;  %550 = vmatprep.subr.mxu0 %v620_v1  ;;  %v474_v22 = vld [vmem:[%s919_s6] ss:$0 sm:$0xff] }
  0x27   :  { %500 = vmatpush3.msra.mxu1 %v153_v28  ;;  %551 = vmatpush3.msra.mxu0 %v269_v44  ;;  %v475_v28 = vld [vmem:[#allocation3] ss:$0 sm:$0xff] }
  0x28   :  { %501 = vmatprep.subr.mxu1 %v168_v29  ;;  %552 = vmatprep.subr.mxu0 %v620_v1 }
  0x29   :  { %502 = vmatpush3.msra.mxu1 %v152_v30  ;;  %553 = vmatpush3.msra.mxu0 %v268_v45 }
  0x2a   :  { %503 = vmatprep.subr.mxu1 %v167_v31  ;;  %554 = vmatprep.subr.mxu0 %v620_v1 }
  0x2b   :  { %504 = vmatpush3.msra.mxu1 %v151_v32  ;;  %555 = vmatpush3.msra.mxu0 %v267_v46  ;;  %v477_v32 = vld [vmem:[%s922_s9] ss:$0 sm:$0xff] }
  0x2c   :  { %505 = vmatprep.subr.mxu1 %v166_v33  ;;  %556 = vmatprep.subr.mxu0 %v620_v1 }
  0x2d   :  { %506 = vmatpush3.msra.mxu1 %v150_v34  ;;  %557 = vmatpush3.msra.mxu0 %v266_v47 }
  0x2e   :  { %507 = vmatprep.subr.mxu1 %v165_v35  ;;  %558 = vmatprep.subr.mxu0 %v620_v1 }
  0x2f   :  { %508 = vmatpush3.msra.mxu1 %v149_v36  ;;  %559 = vmatpush3.msra.mxu0 %v265_v48  ;;  %v478_v36 = vld [vmem:[#allocation2] ss:$0 sm:$0xff] }
  0x30   :  { %509 = vmatprep.subr.mxu1 %v164_v37  ;;  %560 = vmatprep.subr.mxu0 %v620_v1 }
  0x31   :  { %510 = vmatpush3.msra.mxu1 %v148_v38  ;;  %561 = vmatpush3.msra.mxu0 %v264_v0 }
  0x32   :  { %575 = vmatprep.subr.mxu1 %v620_v1  ;;  %562 = vmatprep.subr.mxu0 %v620_v1 }
  0x33   :  { %563 = vmatpush3.msra.mxu0 %v263_v2 }
  0x34   :  { %564 = vmatprep.subr.mxu0 %v620_v1 }
  0x35   :  { %565 = vmatpush3.msra.mxu0 %v262_v3 }
  0x36   :  { %566 = vmatprep.subr.mxu0 %v620_v1 }
  0x37   :  { %567 = vmatpush3.msra.mxu0 %v261_v4 }
  0x38   :  { %568 = vmatprep.subr.mxu0 %v620_v1 }
  0x39   :  { %569 = vmatpush3.msra.mxu0 %v260_v5 }
  0x3a   :  { %570 = vmatprep.subr.mxu0 %v620_v1 }
  0x3b   :  { %571 = vmatpush3.msra.mxu0 %v259_v6 }
  0xd5   :  { %v139_v56 = vpop.f32.mrf.mxu0 }
  0xd6   :  { %v140_v57 = vadd.f32 %v139_v56, %v62_v54 }
  0xd7   :  { %v141_v58 = vpop.f32.mrf.mxu0 }
  0xd8   :  { %v142_v59 = vadd.f32 %v141_v58, %v66_v55  ;;  %v144_v60 = vmul.f32 0.01, %v140_v57 }
  0xda   :  { %v145_v61 = vmul.f32 0.01, %v142_v59  ;;  %v146_v63 = vmax.f32 %v140_v57, %v144_v60 }
  0xdc   :  { %v147_v62 = vmax.f32 %v142_v59, %v145_v61 }
  0xde   :  { %251 = vmatprep.mubr.f32.mxu1 %v147_v62 }
  0xdf   :  { %252 = vmatmul.mubr.f32.vlgmr.msra.gmra.mxu1 %v146_v63 }
  0xe0   :  { %591 = vmatprep.mubr.msk.f32.mxu1 %vm621_vm1, %v620_v1  ;;  %576 = vmatpush3.msra.mxu1 %v361_v7 }
  0xe1   :  { %577 = vmatprep.subr.mxu1 %v620_v1 }
  0xe2   :  { %578 = vmatpush3.msra.mxu1 %v360_v8 }
  0xe3   :  { %579 = vmatprep.subr.mxu1 %v620_v1 }
  0xe4   :  { %580 = vmatpush3.msra.mxu1 %v359_v9 }
  0xe5   :  { %581 = vmatprep.subr.mxu1 %v620_v1 }
  0xe6   :  { %582 = vmatpush3.msra.mxu1 %v358_v10 }
  0xe7   :  { %583 = vmatprep.subr.mxu1 %v620_v1 }
  0xe8   :  { %584 = vmatpush3.msra.mxu1 %v357_v18 }
  0xe9   :  { %585 = vmatprep.subr.mxu1 %v620_v1 }
  0xea   :  { %586 = vmatpush3.msra.mxu1 %v356_v19 }
  0xeb   :  { %587 = vmatprep.subr.mxu1 %v620_v1 }
  0xec   :  { %588 = vmatpush3.msra.mxu1 %v355_v20 }
  0xed   :  { %589 = vmatprep.subr.mxu1 %v620_v1 }
  0xee   :  { %590 = vmatpush3.msra.mxu1 %v354_v21 }
 0x19f   :  { %v511_v11 = vpop.f32.mrf.mxu1 }
 0x1a1   :  { %v512_v13 = vpop.f32.mrf.mxu1 }
 0x1a2   :  { %v513_v14 = vadd.f32 %v512_v13, %v511_v11 }
 0x1a4   :  { %v254_v15 = vadd.f32 %v513_v14, %v473_v12 }
 0x1a6   :  { %v257_v16 = vmul.f32 0.01, %v254_v15 }
 0x1a8   :  { %v258_v17 = vmax.f32 %v254_v15, %v257_v16 }
 0x1aa   :  { %573 = vmatmul.mubr.f32.vlgmr.msra.gmra.mxu0 %v258_v17 }
 0x26a   :  { %v348_v23 = vpop.f32.mrf.mxu0 }
 0x26b   :  { %v349_v24 = vadd.f32 %v474_v22, %v348_v23 }
 0x26c   :  { %v574_v25 = vpop.f32.mrf.mxu0 }
 0x26d   :  { %v352_v26 = vmul.f32 0.01, %v349_v24 }
 0x26f   :  { %v353_v27 = vmax.f32 %v349_v24, %v352_v26 }
 0x271   :  { %592 = vmatmul.mubr.msk.f32.vlgmr.msra.gmra.mxu1 %vm369_vm2, %v353_v27 }
 0x331   :  { %v439_v29 = vpop.f32.mrf.mxu1 }
 0x332   :  { %v440_v30 = vadd.f32 %v475_v28, %v439_v29 }
 0x333   :  { %v593_v1 = vpop.f32.mrf.mxu1 }
 0x334   :  { %v443_v31 = vmul.f32 0.01, %v440_v30 }
 0x336   :  { %v444_v33 = vmax.f32 %v440_v30, %v443_v31 }
 0x338   :  { %v452_v34 = vmul.f32 %v477_v32, %v444_v33 }
 0x33a   :  { %v454_v35 = vsel %vm453_vm3, %v452_v34, 0.0 }
 0x33b   :  { %455 = vadd.xlane.f32.xlu0 %v454_v35 }
 0x3c4   :  { %v456_v37 = vpop.xlane.xlu0 %455 }
 0x3c5   :  { %v464_v38 = vadd.f32 %v478_v36, %v456_v37 }
 0x3c7   :  { %466 = vst.msk [vmem:[%s924_s11] sm:$0xff] %vm465_vm4, %v464_v38 }
 0x3c8   :  { %471 = vsyncpa [#allocation4], 1 }

</bundles_post_ra>
